<compile_context>
chip_gen: v5e
topology: v5e:2x2
jax: 0.10.0
libtpu: 0.0.40
codegen_flags: <defaults>
</compile_context>

<pallas_src>
import math
from functools import partial

import jax
import jax.numpy as jnp
from jax import lax
from jax.experimental import pallas as pl
from jax.experimental.pallas import tpu as pltpu


def _round_up(a: int, b: int) -> int:
    return -(-a // b) * b


def _outconv_kernel(x_ref, w_ref, b_ref, o_ref, pool_ref, flat_ref, *, h_total):
    """One (batch-chunk g, H-tile h) grid step.

    x_ref   : (NB, C_in, H_TILE, W)    input tile (streamed over H)
    w_ref   : (K, C_out_p, C_in)       conv weight, tap-major, C_out padded to 8
    b_ref   : (C_out_p, 1)             bias (padded)
    o_ref   : (1, C_out_p, NB*W)       output slab for this batch chunk
    pool_ref: (NB, C_in, W) f32        running sum over H            (VMEM scratch)
    flat_ref: (C_in, NB*W + 2*pad) f32 lane-flattened pooled slab    (VMEM scratch)
    """
    NB, C_in, _, W = x_ref.shape
    K, C_out_p, _ = w_ref.shape
    pad = (K - 1) // 2
    NBW = NB * W

    h = pl.program_id(1)

    @pl.when(h == 0)
    def _init():
        pool_ref[...] = jnp.zeros_like(pool_ref)

    # Hot path (every H tile): one fused reduce over the tile's H axis.  This is the
    # only per-step work, so the kernel tracks the HBM roofline.
    pool_ref[...] += jnp.sum(x_ref[...].astype(jnp.float32), axis=2)

    @pl.when(h == pl.num_programs(1) - 1)
    def _finalize():
        inv_h = 1.0 / float(h_total)
        # Zero only the 2*pad outer edge columns; interior batch boundaries are
        # handled by the tap masks below (no per-batch padding columns needed).
        if pad:
            flat_ref[:, :pad] = jnp.zeros((C_in, pad), jnp.float32)
            flat_ref[:, pad + NBW:] = jnp.zeros((C_in, pad), jnp.float32)
        # (NB, C_in, W) -> (C_in, NB*W): NB tiny copies, once per chunk (amortized
        # over all H tiles) so the matmul rhs / output store are lane-dense.
        for b in range(NB):
            flat_ref[:, pad + b * W: pad + (b + 1) * W] = pool_ref[b] * inv_h

        # Position of every lane inside its batch segment, for masking the taps.
        wpos = lax.broadcasted_iota(jnp.int32, (C_in, NBW), 1) % W

        acc = jnp.zeros((C_out_p, NBW), jnp.float32)
        for k in range(K):                      # K static-offset taps, K matmuls
            s = k - pad                         # tap offset in [-pad, pad]
            tap = flat_ref[:, k: k + NBW]       # == pooled[:, w + s] (edge-padded)
            if s > 0:                           # zero lanes whose source would
                tap = jnp.where(wpos < W - s, tap, 0.0)    # cross into next row
            elif s < 0:
                tap = jnp.where(wpos >= -s, tap, 0.0)      # or the previous row
            acc = acc + jnp.dot(w_ref[k], tap,
                                preferred_element_type=jnp.float32)
        o_ref[0] = (acc + b_ref[...]).astype(o_ref.dtype)


def _choose_nb(N: int, W: int):
    """Pick NB (batch rows folded into the lane axis) and the padded batch size."""
    # Smallest NB with NB*W a multiple of 128 (lane-dense output stores), capped.
    nb = min(128 // math.gcd(W, 128), 16)
    # Never inflate HBM traffic by more than ~2x with batch padding.
    while nb > 1 and _round_up(N, nb) > 2 * N:
        nb //= 2
    n_pad = _round_up(N, nb)
    # v7x: try to give the "parallel" chunk axis >=2 steps without giving up
    # lane-dense stores or the 2x padding bound.
    if n_pad // nb < 2:
        for cand in range(nb - 1, 0, -1):
            if (cand * W) % 128 == 0 and _round_up(N, cand) // cand >= 2 \
                    and _round_up(N, cand) <= 2 * N:
                nb, n_pad = cand, _round_up(N, cand)
                break
        # TODO(synk): when N*W is too small for two lane-dense chunks (demo shape),
        # one v7x TensorCore idles; a W-tile "parallel" axis would recover it.
    return nb, n_pad


def _choose_h_tile(H: int, row_bytes: int) -> int:
    """Largest multiple-of-8 divisor of H whose input block stays ~<= 2 MiB."""
    if H % 8:
        # TODO(synk): mask a ragged H tail instead of falling back to full H.
        return H
    budget = 2 << 20
    h = max(8, min(H, (budget // max(row_bytes, 1)) // 8 * 8))
    while H % h:
        h -= 8
    return h


def out_conv(x, weight, bias, *, h_tile=None):
    """x: (N, C_in, H, W); weight: (C_out, C_in, 1, K) with K odd; bias: (C_out,).
    Returns (N, C_out, 1, W) == AdaptiveAvgPool2d((1, None))(Conv2d(x))."""
    N, C_in, H, W = x.shape
    C_out, C_in_w, kh, K = weight.shape
    assert kh == 1 and C_in_w == C_in and K % 2 == 1
    pad = K // 2

    nb, n_pad = _choose_nb(N, W)
    g = n_pad // nb
    if h_tile is None:
        h_tile = _choose_h_tile(H, nb * C_in * W * 4)
    assert H % h_tile == 0 and (h_tile % 8 == 0 or h_tile == H)
    n_h = H // h_tile

    c_out_p = _round_up(C_out, 8)             # sublane-dense output stores

    # Wrapper-side (free) layout plumbing.
    if n_pad != N:
        x = jnp.pad(x, ((0, n_pad - N), (0, 0), (0, 0), (0, 0)))
    w2 = jnp.transpose(weight[:, :, 0, :], (2, 0, 1))           # (K, C_out, C_in)
    w2 = jnp.pad(w2, ((0, 0), (0, c_out_p - C_out), (0, 0)))    # (K, C_out_p, C_in)
    b2 = jnp.pad(bias, (0, c_out_p - C_out)).reshape(c_out_p, 1)

    # Explicit VMEM budget (v7x has only 64 MiB/TC; leave generous headroom).
    x_blk = nb * C_in * h_tile * W * 4
    o_blk = c_out_p * nb * W * 4
    scratch = nb * C_in * W * 4 + C_in * (nb * W + 2 * pad) * 4
    wgt = (K * c_out_p * C_in + c_out_p) * 4
    vmem_limit = int(min(max(2 * (2 * x_blk + 2 * o_blk + 2 * wgt + scratch),
                             4 << 20), 48 << 20))

    out3 = pl.pallas_call(
        partial(_outconv_kernel, h_total=H),
        out_shape=jax.ShapeDtypeStruct((g, c_out_p, nb * W), x.dtype),
        grid_spec=pltpu.PrefetchScalarGridSpec(
            num_scalar_prefetch=0,
            grid=(g, n_h),                                 # (batch chunks, H tiles)
            in_specs=[
                pl.BlockSpec((nb, C_in, h_tile, W), lambda i, j: (i, 0, j, 0)),
                pl.BlockSpec((K, c_out_p, C_in), lambda i, j: (0, 0, 0)),
                pl.BlockSpec((c_out_p, 1), lambda i, j: (0, 0)),
            ],
            out_specs=pl.BlockSpec((1, c_out_p, nb * W), lambda i, j: (i, 0, 0)),
            scratch_shapes=[
                pltpu.VMEM((nb, C_in, W), jnp.float32),
                pltpu.VMEM((C_in, nb * W + 2 * pad), jnp.float32),
            ],
        ),
        compiler_params=pltpu.CompilerParams(
            dimension_semantics=("parallel", "arbitrary"),
            vmem_limit_bytes=vmem_limit,
        ),
    )(x, w2, b2)

    # Free XLA plumbing back to the PyTorch layout (N, C_out, 1, W).
    out = out3[:, :C_out, :].reshape(g, C_out, nb, W)
    out = jnp.transpose(out, (0, 2, 1, 3)).reshape(g * nb, C_out, W)[:N]
    return out[:, :, None, :]


def _reference(x, weight, bias):
    pad = weight.shape[-1] // 2
    y = lax.conv_general_dilated(
        x, weight, window_strides=(1, 1), padding=[(0, 0), (pad, pad)],
        dimension_numbers=("NCHW", "OIHW", "NCHW"))
    y = y + bias[None, :, None, None]
    return jnp.mean(y, axis=2, keepdims=True)


if __name__ == "__main__":
    N, C_IN, C_OUT, H, W = 2, 4, 3, 16, 16

    key = jax.random.PRNGKey(0)
    kx, kw_, kb = jax.random.split(key, 3)
    x = jax.random.normal(kx, (N, C_IN, H, W), dtype=jnp.float32)
    weight = jax.random.normal(kw_, (C_OUT, C_IN, 1, 5), dtype=jnp.float32) * 0.1
    bias = jax.random.normal(kb, (C_OUT,), dtype=jnp.float32) * 0.1

    # h_tile=8 -> two H grid steps, exercising the streamed-accumulation path.
    out = out_conv(x, weight, bias, h_tile=8)
    out = jax.block_until_ready(out)

    ref = _reference(x, weight, bias)
    assert out.shape == (N, C_OUT, 1, W)
    assert jnp.allclose(out, ref, atol=1e-4, rtol=1e-4)

    print("KERNEL_OK")
</pallas_src>

<mosaic_0001>
module attributes {stable_mosaic.version = 11 : i64} {
  func.func @_outconv_kernel(%arg0: i32, %arg1: i32, %arg2: memref<4x4x8x16xf32, #tpu.memory_space<vmem>>, %arg3: memref<5x8x4xf32, #tpu.memory_space<vmem>>, %arg4: memref<8x1xf32, #tpu.memory_space<vmem>>, %arg5: memref<1x8x64xf32, #tpu.memory_space<vmem>>, %arg6: memref<4x4x16xf32, #tpu.memory_space<vmem>>, %arg7: memref<4x68xf32, #tpu.memory_space<vmem>>) attributes {dimension_semantics = [#tpu.dimension_semantics<parallel>, #tpu.dimension_semantics<arbitrary>], iteration_bounds = array<i64: 1, 2>, scalar_prefetch = 0 : i64, scratch_operands = 2 : i64, tpu.core_type = #tpu.core_type<tc>, window_params = [{transform_indices = @transform_0, window_bounds = array<i64: 4, 4, 8, 16>}, {pipeline_mode = #tpu.pipeline_mode<synchronous>, transform_indices = @transform_1, window_bounds = array<i64: 5, 8, 4>}, {pipeline_mode = #tpu.pipeline_mode<synchronous>, transform_indices = @transform_2, window_bounds = array<i64: 8, 1>}, {transform_indices = @transform_3, window_bounds = array<i64: 1, 8, 64>}]} {
    %c0_i32 = arith.constant 0 : i32
    %0 = arith.cmpi eq, %arg1, %c0_i32 : i32
    %1 = arith.extui %0 : i1 to i32
    %c0_i32_0 = arith.constant 0 : i32
    %2 = arith.cmpi ne, %1, %c0_i32_0 : i32
    scf.if %2 {
      %cst_11 = arith.constant 0.000000e+00 : f32
      %11 = vector.broadcast %cst_11 : f32 to vector<4x4x16xf32>
      %c0_12 = arith.constant 0 : index
      %c0_13 = arith.constant 0 : index
      %c0_14 = arith.constant 0 : index
      %12 = vector.load %arg6[%c0_12, %c0_13, %c0_14] : memref<4x4x16xf32, #tpu.memory_space<vmem>>, vector<4x4x16xf32>
      tpu.vector_store %arg6[%c0_12, %c0_13, %c0_14], %11 {strides = array<i32>} : memref<4x4x16xf32, #tpu.memory_space<vmem>>, vector<4x4x16xf32>,
    } else {
    }
    %c0 = arith.constant 0 : index
    %c0_1 = arith.constant 0 : index
    %c0_2 = arith.constant 0 : index
    %3 = vector.load %arg6[%c0, %c0_1, %c0_2] : memref<4x4x16xf32, #tpu.memory_space<vmem>>, vector<4x4x16xf32>
    %c0_3 = arith.constant 0 : index
    %c0_4 = arith.constant 0 : index
    %c0_5 = arith.constant 0 : index
    %c0_6 = arith.constant 0 : index
    %4 = vector.load %arg2[%c0_3, %c0_4, %c0_5, %c0_6] : memref<4x4x8x16xf32, #tpu.memory_space<vmem>>, vector<4x4x8x16xf32>
    %cst = arith.constant dense<0.000000e+00> : vector<4x4x16xf32>
    %5 = vector.multi_reduction <add>, %4, %cst [2] : vector<4x4x8x16xf32> to vector<4x4x16xf32>
    %6 = arith.addf %3, %5 : vector<4x4x16xf32>
    %c0_7 = arith.constant 0 : index
    %c0_8 = arith.constant 0 : index
    %c0_9 = arith.constant 0 : index
    %7 = vector.load %arg6[%c0_7, %c0_8, %c0_9] : memref<4x4x16xf32, #tpu.memory_space<vmem>>, vector<4x4x16xf32>
    tpu.vector_store %arg6[%c0_7, %c0_8, %c0_9], %6 {strides = array<i32>} : memref<4x4x16xf32, #tpu.memory_space<vmem>>, vector<4x4x16xf32>,
    %c1_i32 = arith.constant 1 : i32
    %8 = arith.cmpi eq, %arg1, %c1_i32 : i32
    %9 = arith.extui %8 : i1 to i32
    %c0_i32_10 = arith.constant 0 : i32
    %10 = arith.cmpi ne, %9, %c0_i32_10 : i32
    scf.if %10 {
      %cst_11 = arith.constant 0.000000e+00 : f32
      %11 = vector.broadcast %cst_11 : f32 to vector<4x2xf32>
      %c0_12 = arith.constant 0 : index
      %c0_13 = arith.constant 0 : index
      %12 = vector.load %arg7[%c0_12, %c0_13] : memref<4x68xf32, #tpu.memory_space<vmem>>, vector<4x2xf32>
      tpu.vector_store %arg7[%c0_12, %c0_13], %11 {strides = array<i32>} : memref<4x68xf32, #tpu.memory_space<vmem>>, vector<4x2xf32>,
      %cst_14 = arith.constant 0.000000e+00 : f32
      %13 = vector.broadcast %cst_14 : f32 to vector<4x2xf32>
      %c0_15 = arith.constant 0 : index
      %c66 = arith.constant 66 : index
      %14 = vector.load %arg7[%c0_15, %c66] : memref<4x68xf32, #tpu.memory_space<vmem>>, vector<4x2xf32>
      tpu.vector_store %arg7[%c0_15, %c66], %13 {strides = array<i32>} : memref<4x68xf32, #tpu.memory_space<vmem>>, vector<4x2xf32>,
      %c0_16 = arith.constant 0 : index
      %c0_17 = arith.constant 0 : index
      %c0_18 = arith.constant 0 : index
      %15 = vector.load %arg6[%c0_16, %c0_17, %c0_18] : memref<4x4x16xf32, #tpu.memory_space<vmem>>, vector<1x4x16xf32>
      %16 = vector.shape_cast %15 : vector<1x4x16xf32> to vector<4x16xf32>
      %cst_19 = arith.constant 6.250000e-02 : f32
      %17 = vector.broadcast %cst_19 : f32 to vector<4x16xf32>
      %18 = arith.mulf %16, %17 : vector<4x16xf32>
      %c0_20 = arith.constant 0 : index
      %c2 = arith.constant 2 : index
      %19 = vector.load %arg7[%c0_20, %c2] : memref<4x68xf32, #tpu.memory_space<vmem>>, vector<4x16xf32>
      tpu.vector_store %arg7[%c0_20, %c2], %18 {strides = array<i32>} : memref<4x68xf32, #tpu.memory_space<vmem>>, vector<4x16xf32>,
      %c1 = arith.constant 1 : index
      %c0_21 = arith.constant 0 : index
      %c0_22 = arith.constant 0 : index
      %20 = vector.load %arg6[%c1, %c0_21, %c0_22] : memref<4x4x16xf32, #tpu.memory_space<vmem>>, vector<1x4x16xf32>
      %21 = vector.shape_cast %20 : vector<1x4x16xf32> to vector<4x16xf32>
      %cst_23 = arith.constant 6.250000e-02 : f32
      %22 = vector.broadcast %cst_23 : f32 to vector<4x16xf32>
      %23 = arith.mulf %21, %22 : vector<4x16xf32>
      %c0_24 = arith.constant 0 : index
      %c18 = arith.constant 18 : index
      %24 = vector.load %arg7[%c0_24, %c18] : memref<4x68xf32, #tpu.memory_space<vmem>>, vector<4x16xf32>
      tpu.vector_store %arg7[%c0_24, %c18], %23 {strides = array<i32>} : memref<4x68xf32, #tpu.memory_space<vmem>>, vector<4x16xf32>,
      %c2_25 = arith.constant 2 : index
      %c0_26 = arith.constant 0 : index
      %c0_27 = arith.constant 0 : index
      %25 = vector.load %arg6[%c2_25, %c0_26, %c0_27] : memref<4x4x16xf32, #tpu.memory_space<vmem>>, vector<1x4x16xf32>
      %26 = vector.shape_cast %25 : vector<1x4x16xf32> to vector<4x16xf32>
      %cst_28 = arith.constant 6.250000e-02 : f32
      %27 = vector.broadcast %cst_28 : f32 to vector<4x16xf32>
      %28 = arith.mulf %26, %27 : vector<4x16xf32>
      %c0_29 = arith.constant 0 : index
      %c34 = arith.constant 34 : index
      %29 = vector.load %arg7[%c0_29, %c34] : memref<4x68xf32, #tpu.memory_space<vmem>>, vector<4x16xf32>
      tpu.vector_store %arg7[%c0_29, %c34], %28 {strides = array<i32>} : memref<4x68xf32, #tpu.memory_space<vmem>>, vector<4x16xf32>,
      %c3 = arith.constant 3 : index
      %c0_30 = arith.constant 0 : index
      %c0_31 = arith.constant 0 : index
      %30 = vector.load %arg6[%c3, %c0_30, %c0_31] : memref<4x4x16xf32, #tpu.memory_space<vmem>>, vector<1x4x16xf32>
      %31 = vector.shape_cast %30 : vector<1x4x16xf32> to vector<4x16xf32>
      %cst_32 = arith.constant 6.250000e-02 : f32
      %32 = vector.broadcast %cst_32 : f32 to vector<4x16xf32>
      %33 = arith.mulf %31, %32 : vector<4x16xf32>
      %c0_33 = arith.constant 0 : index
      %c50 = arith.constant 50 : index
      %34 = vector.load %arg7[%c0_33, %c50] : memref<4x68xf32, #tpu.memory_space<vmem>>, vector<4x16xf32>
      tpu.vector_store %arg7[%c0_33, %c50], %33 {strides = array<i32>} : memref<4x68xf32, #tpu.memory_space<vmem>>, vector<4x16xf32>,
      %35 = tpu.iota {dimensions = array<i32: 1>} : vector<4x64xi32>
      %c16_i32 = arith.constant 16 : i32
      %c0_i32_34 = arith.constant 0 : i32
      %36 = arith.cmpi eq, %c16_i32, %c0_i32_34 : i32
      %c1_i32_35 = arith.constant 1 : i32
      %37 = arith.select %36, %c1_i32_35, %c16_i32 : i32
      %38 = vector.broadcast %37 : i32 to vector<4x64xi32>
      %39 = arith.remsi %35, %38 : vector<4x64xi32>
      %c0_i32_36 = arith.constant 0 : i32
      %40 = vector.broadcast %c0_i32_36 : i32 to vector<4x64xi32>
      %41 = arith.cmpi ne, %39, %40 : vector<4x64xi32>
      %c0_i32_37 = arith.constant 0 : i32
      %42 = vector.broadcast %c0_i32_37 : i32 to vector<4x64xi32>
      %43 = arith.cmpi slt, %39, %42 : vector<4x64xi32>
      %c0_i32_38 = arith.constant 0 : i32
      %44 = arith.cmpi slt, %37, %c0_i32_38 : i32
      %45 = vector.broadcast %44 : i1 to vector<4x64xi1>
      %46 = vector.broadcast %45 : vector<4x64xi1> to vector<4x64xi1>
      %47 = arith.xori %43, %46 : vector<4x64xi1>
      %48 = arith.andi %47, %41 : vector<4x64xi1>
      %49 = vector.broadcast %37 : i32 to vector<4x64xi32>
      %50 = arith.addi %39, %49 : vector<4x64xi32>
      %51 = arith.select %48, %50, %39 : vector<4x64xi1>, vector<4x64xi32>
      %cst_39 = arith.constant 0.000000e+00 : f32
      %52 = vector.broadcast %cst_39 : f32 to vector<8x64xf32>
      %c0_40 = arith.constant 0 : index
      %c0_41 = arith.constant 0 : index
      %53 = vector.load %arg7[%c0_40, %c0_41] : memref<4x68xf32, #tpu.memory_space<vmem>>, vector<4x64xf32>
      %c2_i32 = arith.constant 2 : i32
      %54 = vector.broadcast %c2_i32 : i32 to vector<4x64xi32>
      %55 = arith.cmpi sge, %51, %54 : vector<4x64xi32>
      %cst_42 = arith.constant 0.000000e+00 : f32
      %56 = vector.broadcast %cst_42 : f32 to vector<4x64xf32>
      %57 = arith.select %55, %53, %56 : vector<4x64xi1>, vector<4x64xf32>
      %c0_43 = arith.constant 0 : index
      %c0_44 = arith.constant 0 : index
      %c0_45 = arith.constant 0 : index
      %58 = vector.load %arg3[%c0_43, %c0_44, %c0_45] : memref<5x8x4xf32, #tpu.memory_space<vmem>>, vector<1x8x4xf32>
      %59 = vector.shape_cast %58 : vector<1x8x4xf32> to vector<8x4xf32>
      %cst_46 = arith.constant dense<0.000000e+00> : vector<8x64xf32>
      %60 = tpu.matmul %59, %57, %cst_46 {dimension_numbers = #tpu.dot_dimension_numbers<[1], [0], [0], [1], [0, 0, 1, 1], [], []>} : vector<8x4xf32>, vector<4x64xf32>, vector<8x64xf32> -> vector<8x64xf32>
      %61 = arith.addf %52, %60 : vector<8x64xf32>
      %c0_47 = arith.constant 0 : index
      %c1_48 = arith.constant 1 : index
      %62 = vector.load %arg7[%c0_47, %c1_48] : memref<4x68xf32, #tpu.memory_space<vmem>>, vector<4x64xf32>
      %c1_i32_49 = arith.constant 1 : i32
      %63 = vector.broadcast %c1_i32_49 : i32 to vector<4x64xi32>
      %64 = arith.cmpi sge, %51, %63 : vector<4x64xi32>
      %cst_50 = arith.constant 0.000000e+00 : f32
      %65 = vector.broadcast %cst_50 : f32 to vector<4x64xf32>
      %66 = arith.select %64, %62, %65 : vector<4x64xi1>, vector<4x64xf32>
      %c1_51 = arith.constant 1 : index
      %c0_52 = arith.constant 0 : index
      %c0_53 = arith.constant 0 : index
      %67 = vector.load %arg3[%c1_51, %c0_52, %c0_53] : memref<5x8x4xf32, #tpu.memory_space<vmem>>, vector<1x8x4xf32>
      %68 = vector.shape_cast %67 : vector<1x8x4xf32> to vector<8x4xf32>
      %cst_54 = arith.constant dense<0.000000e+00> : vector<8x64xf32>
      %69 = tpu.matmul %68, %66, %cst_54 {dimension_numbers = #tpu.dot_dimension_numbers<[1], [0], [0], [1], [0, 0, 1, 1], [], []>} : vector<8x4xf32>, vector<4x64xf32>, vector<8x64xf32> -> vector<8x64xf32>
      %70 = arith.addf %61, %69 : vector<8x64xf32>
      %c0_55 = arith.constant 0 : index
      %c2_56 = arith.constant 2 : index
      %71 = vector.load %arg7[%c0_55, %c2_56] : memref<4x68xf32, #tpu.memory_space<vmem>>, vector<4x64xf32>
      %c2_57 = arith.constant 2 : index
      %c0_58 = arith.constant 0 : index
      %c0_59 = arith.constant 0 : index
      %72 = vector.load %arg3[%c2_57, %c0_58, %c0_59] : memref<5x8x4xf32, #tpu.memory_space<vmem>>, vector<1x8x4xf32>
      %73 = vector.shape_cast %72 : vector<1x8x4xf32> to vector<8x4xf32>
      %cst_60 = arith.constant dense<0.000000e+00> : vector<8x64xf32>
      %74 = tpu.matmul %73, %71, %cst_60 {dimension_numbers = #tpu.dot_dimension_numbers<[1], [0], [0], [1], [0, 0, 1, 1], [], []>} : vector<8x4xf32>, vector<4x64xf32>, vector<8x64xf32> -> vector<8x64xf32>
      %75 = arith.addf %70, %74 : vector<8x64xf32>
      %c0_61 = arith.constant 0 : index
      %c3_62 = arith.constant 3 : index
      %76 = vector.load %arg7[%c0_61, %c3_62] : memref<4x68xf32, #tpu.memory_space<vmem>>, vector<4x64xf32>
      %c15_i32 = arith.constant 15 : i32
      %77 = vector.broadcast %c15_i32 : i32 to vector<4x64xi32>
      %78 = arith.cmpi slt, %51, %77 : vector<4x64xi32>
      %cst_63 = arith.constant 0.000000e+00 : f32
      %79 = vector.broadcast %cst_63 : f32 to vector<4x64xf32>
      %80 = arith.select %78, %76, %79 : vector<4x64xi1>, vector<4x64xf32>
      %c3_64 = arith.constant 3 : index
      %c0_65 = arith.constant 0 : index
      %c0_66 = arith.constant 0 : index
      %81 = vector.load %arg3[%c3_64, %c0_65, %c0_66] : memref<5x8x4xf32, #tpu.memory_space<vmem>>, vector<1x8x4xf32>
      %82 = vector.shape_cast %81 : vector<1x8x4xf32> to vector<8x4xf32>
      %cst_67 = arith.constant dense<0.000000e+00> : vector<8x64xf32>
      %83 = tpu.matmul %82, %80, %cst_67 {dimension_numbers = #tpu.dot_dimension_numbers<[1], [0], [0], [1], [0, 0, 1, 1], [], []>} : vector<8x4xf32>, vector<4x64xf32>, vector<8x64xf32> -> vector<8x64xf32>
      %84 = arith.addf %75, %83 : vector<8x64xf32>
      %c0_68 = arith.constant 0 : index
      %c4 = arith.constant 4 : index
      %85 = vector.load %arg7[%c0_68, %c4] : memref<4x68xf32, #tpu.memory_space<vmem>>, vector<4x64xf32>
      %c14_i32 = arith.constant 14 : i32
      %86 = vector.broadcast %c14_i32 : i32 to vector<4x64xi32>
      %87 = arith.cmpi slt, %51, %86 : vector<4x64xi32>
      %cst_69 = arith.constant 0.000000e+00 : f32
      %88 = vector.broadcast %cst_69 : f32 to vector<4x64xf32>
      %89 = arith.select %87, %85, %88 : vector<4x64xi1>, vector<4x64xf32>
      %c4_70 = arith.constant 4 : index
      %c0_71 = arith.constant 0 : index
      %c0_72 = arith.constant 0 : index
      %90 = vector.load %arg3[%c4_70, %c0_71, %c0_72] : memref<5x8x4xf32, #tpu.memory_space<vmem>>, vector<1x8x4xf32>
      %91 = vector.shape_cast %90 : vector<1x8x4xf32> to vector<8x4xf32>
      %cst_73 = arith.constant dense<0.000000e+00> : vector<8x64xf32>
      %92 = tpu.matmul %91, %89, %cst_73 {dimension_numbers = #tpu.dot_dimension_numbers<[1], [0], [0], [1], [0, 0, 1, 1], [], []>} : vector<8x4xf32>, vector<4x64xf32>, vector<8x64xf32> -> vector<8x64xf32>
      %93 = arith.addf %84, %92 : vector<8x64xf32>
      %c0_74 = arith.constant 0 : index
      %c0_75 = arith.constant 0 : index
      %94 = vector.load %arg4[%c0_74, %c0_75] : memref<8x1xf32, #tpu.memory_space<vmem>>, vector<8x1xf32>
      %95 = vector.broadcast %94 : vector<8x1xf32> to vector<8x64xf32>
      %96 = arith.addf %93, %95 : vector<8x64xf32>
      %c0_76 = arith.constant 0 : index
      %c0_77 = arith.constant 0 : index
      %c0_78 = arith.constant 0 : index
      %97 = vector.load %arg5[%c0_76, %c0_77, %c0_78] : memref<1x8x64xf32, #tpu.memory_space<vmem>>, vector<1x8x64xf32>
      %98 = vector.shape_cast %97 : vector<1x8x64xf32> to vector<8x64xf32>
      %99 = vector.shape_cast %96 : vector<8x64xf32> to vector<1x8x64xf32>
      tpu.vector_store %arg5[%c0_76, %c0_77, %c0_78], %99 {strides = array<i32>} : memref<1x8x64xf32, #tpu.memory_space<vmem>>, vector<1x8x64xf32>,
    } else {
    }
    return
  }
  func.func @transform_0(%arg0: i32, %arg1: i32) -> (i32, i32, i32, i32) {
    %c0_i32 = arith.constant 0 : i32
    %c0_i32_0 = arith.constant 0 : i32
    %c0_i32_1 = arith.constant 0 : i32
    return %arg0, %c0_i32, %arg1, %c0_i32_0 : i32, i32, i32, i32
  }
  func.func @transform_1(%arg0: i32, %arg1: i32) -> (i32, i32, i32) {
    %c0_i32 = arith.constant 0 : i32
    %c0_i32_0 = arith.constant 0 : i32
    %c0_i32_1 = arith.constant 0 : i32
    %c0_i32_2 = arith.constant 0 : i32
    return %c0_i32, %c0_i32_0, %c0_i32_1 : i32, i32, i32
  }
  func.func @transform_2(%arg0: i32, %arg1: i32) -> (i32, i32) {
    %c0_i32 = arith.constant 0 : i32
    %c0_i32_0 = arith.constant 0 : i32
    %c0_i32_1 = arith.constant 0 : i32
    return %c0_i32, %c0_i32_0 : i32, i32
  }
  func.func @transform_3(%arg0: i32, %arg1: i32) -> (i32, i32, i32) {
    %c0_i32 = arith.constant 0 : i32
    %c0_i32_0 = arith.constant 0 : i32
    %c0_i32_1 = arith.constant 0 : i32
    return %arg0, %c0_i32, %c0_i32_0 : i32, i32, i32
  }
}

</mosaic_0001>

<bundles_post_ra>
// kernel: tpu_custom_call.1
= control target key start
LH: loop header
LB: loop body
LE: loop exit
PB: predicated region body
PF: predicated region fallthrough
CT: control target
= control target key end

     0   :  { %8 = vsyncpa [#allocation5], 0  ;;  %s1115_s0 = inlined_call_operand.hbm [shape: f32[4,4,16,16], index: 0, kind: input, shape index: {}]   ;;  %s1116_s1 = inlined_call_operand.vmem [shape: f32[5,8,4], index: 1, kind: input, shape index: {}]   ;;  %s1117_s2 = inlined_call_operand.vmem [shape: f32[8,1], index: 2, kind: input, shape index: {}]   ;;  %s1118_s3 = inlined_call_operand.hbm [shape: f32[1,8,64], index: 3, kind: output, shape index: {}]  }
   0x1   :  { %10 = vsyncpa [#allocation5 + $0x1], 0 }
   0x2   :  { %11 = vsyncpa [#allocation6], 0  ;;  %s945_s12 = smov 0   ;;  %s947_s13 = smov 0  }
   0x3   :  { %s949_s14 = smov 0   ;;  %s951_s15 = smov 0  }
   0x4   :  { %s953_s16 = smov 0   ;;  %s955_s17 = smov 0  }
   0x5 LB: > { %s691_s18 = sadd.s32 4294967295, %s908_s17   ;;  %s26_s19 = sadd.s32 1, %s904_s16  ;;  %s908_s17 = sphi %s955_s17, %s17_s17   ;;  %s904_s16 = sphi %s953_s16, %s1125_s16   ;;  %s900_s15 = sphi %s951_s15, %s1124_s15   ;;  %s896_s14 = sphi %s949_s14, %s1123_s14   ;;  %s892_s13 = sphi %s947_s13, %s1122_s13   ;;  %s888_s12 = sphi %s945_s12, %s1121_s12  }
   0x6   : > { %p27_p0 = scmp.ge.s32.totalorder %s26_s19, 2  ;;  %s38_s20 = sadd.s32 1, %s896_s14 }
   0x7   : > { %p45_p1 = scmp.ne.s32.totalorder %s896_s14, %s892_s13  ;;  %p46_p2 = scmp.eq.s32.totalorder %s908_s17, 0 }
   0x8   : > { %s1127_s19 = smov (%p27_p0, %s26_s19), 0  ;;  %p51_p4 = scmp.ne.s32.totalorder %s892_s13, %s888_s12 }
   0x9   : > { %p981_p3 = por %p46_p2, %p45_p1  ;;  %s34_s22 = ssub.s32 %s904_s16, %s1127_s19 }
   0xa   : > { %p52_p5 = scmp.eq.s32.totalorder %s691_s18, 0  ;;  %p36_p6 = scmp.eq.s32.totalorder %s34_s22, 0 }
   0xb   : > { %p728_p8 = scmp.lt.s32.totalorder %s908_s17, 2  ;;  %s149_s25 = sand.u32 1, %s896_s14  }
   0xc   : > { %p990_p7 = por %p52_p5, %p51_p4  ;;  %s695_s26 = sshll.u32 %s904_s16, 3 }
   0xd   : > { %s996_s24 = scalar_select %p36_p6, %s896_s14, %s38_s20  }
   0xe   : > { %s694_s27 = sshll.u32 %s149_s25, 7  ;;  %s160_s30 = scalar_lea.hbm %s1115_s0, %s695_s26 }
   0xf   : > { %s161_s4 = sshll.u32 %s160_s30, 4  ;;  %s153_s5 = scalar_lea.vmem [#allocation4], %s694_s27  ;;  %s162_s4 = int_to_ptr.hbm [resolvable:$true] %s161_s4 }
  0x10   : > { %s163_s6 = sshll.u32 %s153_s5, 4  ;;  %p725_p9 = pnand %p728_p8, %p981_p3  ;;  %s164_s6 = int_to_ptr.vmem [resolvable:$true] %s163_s6 }
  0x11   : > { %p696_p10 = scmp.ge.s32.totalorder %s908_s17, 1  ;;  %s150_s7 = scalar_lea.sflag [#allocation5], %s149_s25 }
  0x12   : > { %s910_s8 = smov 256   ;;  %s911_s9 = smov 128  }
  0x13   : > { %s912_s10 = smov 8   ;;  %p171_p11 = scmp.lt.s32.totalorder %s908_s17, 3 }
  0x14   : > { %727 = dma.hbm_to_vmem [thread:$0]  (!%p725_p9), %s162_s4, 2048, %s164_s6, %s150_s7, %s910_s8, %s911_s9, %s912_s10  }
  0x15   : > { %p172_p12 = pnand %p696_p10, %p171_p11 }
  0x16   : > { %s177_s11 = sand.u32 (!%p172_p12), 1, %s892_s13  }
  0x17   : > { %175 = sbr.rel (%p172_p12) target bundleno = 481 (0x1e1), region = 32  ;;  %s697_s12 = sshll.u32 (!%p172_p12), %s177_s11, 7 }
  0x18   : > { %s178_s20 = scalar_lea.sflag (!%p172_p12), [#allocation5], %s177_s11  ;;  %s1008_s22 = scalar_lea.vmem (!%p172_p12), [#allocation4], %s697_s12 }
  0x1c   : > { %879 = dma.done.wait (%p990_p7), %s178_s20, 2048  }
  0x1d   : > { %881 = vsyncadd (%p990_p7), %s178_s20, 4294965248  ;;  %p698_p13 = scmp.ne.s32.totalorder %s900_s15, 0 }
  0x1f   : > { %204 = sbr.rel (%p698_p13) target bundleno = 41 (0x29), region = 40 }
  0x24   : > { %vm205_vm0 = vcmask 125952   ;;  %v913_v0 = vmov 0.0  }
  0x25   : > { %206 = vst.msk [vmem:[#allocation2] sm:$0xf] %vm205_vm0, %v913_v0 }
  0x26   : > { %207 = vst.msk [vmem:[#allocation2 + $0x4] sm:$0xf] %vm205_vm0, %v913_v0 }
  0x27   : > { %208 = vst.msk [vmem:[#allocation2 + $0x8] sm:$0xf] %vm205_vm0, %v913_v0 }
  0x28   : > { %209 = vst.msk [vmem:[#allocation2 + $0xc] sm:$0xf] %vm205_vm0, %v913_v0 }
  0x29 PF: > { %v214_v1 = vld [vmem:[%s1008_s22] sm:$0xff]  ;;  %v215_v2 = vld [vmem:[%s1008_s22 + $0x8] sm:$0xff]  ;;  %vm230_vm1 = vcmask 130048   ;;  %v216_v3 = vld [vmem:[%s1008_s22 + $0x10] sm:$0xff]  ;;  %vm359_vm2 = vcmask 1041409   ;;  %vm361_vm3 = vcmask 1042434  }
  0x2a   : > { %v217_v4 = vld [vmem:[%s1008_s22 + $0x18] sm:$0xff]  ;;  %v231_v5 = vsel %vm230_vm1, %v214_v1, 0.0  ;;  %v238_v6 = vsel %vm230_vm1, %v215_v2, 0.0  ;;  %v245_v9 = vsel %vm230_vm1, %v216_v3, 0.0  ;;  %v218_v13 = vld [vmem:[%s1008_s22 + $0x20] sm:$0xff]  ;;  %v219_v14 = vld [vmem:[%s1008_s22 + $0x28] sm:$0xff] }
  0x2b   : > { %v232_v7 = vrot.slane %v231_v5, 4  ;;  %v239_v8 = vrot.slane %v238_v6, 4  ;;  %v252_v10 = vsel %vm230_vm1, %v217_v4, 0.0  ;;  %v246_v11 = vrot.slane %v245_v9, 4  ;;  %v220_v15 = vld [vmem:[%s1008_s22 + $0x30] sm:$0xff]  ;;  %v221_v18 = vld [vmem:[%s1008_s22 + $0x38] sm:$0xff] }
  0x2c   : > { %v253_v12 = vrot.slane %v252_v10, 4  ;;  %v259_v19 = vsel %vm230_vm1, %v218_v13, 0.0  ;;  %v266_v20 = vsel %vm230_vm1, %v219_v14, 0.0  ;;  %vm363_vm4 = vcmask 1043459   ;;  %v222_v49 = vld [vmem:[%s1008_s22 + $0x40] sm:$0xff]  ;;  %v223_v58 = vld [vmem:[%s1008_s22 + $0x48] sm:$0xff] }
  0x2d   : > { %v233_v16 = vadd.f32 %v232_v7, %v231_v5  ;;  %v240_v17 = vadd.f32 %v239_v8, %v238_v6  ;;  %v247_v21 = vadd.f32 %v246_v11, %v245_v9  ;;  %v260_v23 = vrot.slane %v259_v19, 4  ;;  %v210_v59 = vld [vmem:[#allocation2] sm:$0xf]  ;;  %v224_v3 = vld [vmem:[%s1008_s22 + $0x50] sm:$0xff]  ;;  %v225_v4 = vld [vmem:[%s1008_s22 + $0x58] sm:$0xff]  ;;  %p699_p0 = scmp.ne.s32.totalorder %s900_s15, 1 }
  0x2e   : > { %v254_v22 = vadd.f32 %v253_v12, %v252_v10  ;;  %v267_v24 = vrot.slane %v266_v20, 4  ;;  %v273_v27 = vsel %vm230_vm1, %v220_v15, 0.0  ;;  %v280_v28 = vsel %vm230_vm1, %v221_v18, 0.0  ;;  %v226_v14 = vld [vmem:[%s1008_s22 + $0x60] sm:$0xff]  ;;  %v227_v15 = vld [vmem:[%s1008_s22 + $0x68] sm:$0xff]  ;;  %s914_s21 = smov (!%p699_p0), 2  }
  0x2f   : > { %v234_v25 = vrot.slane %v233_v16, 2  ;;  %v241_v26 = vrot.slane %v240_v17, 2  ;;  %v248_v29 = vrot.slane %v247_v21, 2  ;;  %v261_v31 = vadd.f32 %v260_v23, %v259_v19  ;;  %s915_s23 = smov (!%p699_p0), 34   ;;  %s916_s25 = smov (!%p699_p0), 18  }
  0x30   : > { %v255_v30 = vrot.slane %v254_v22, 2  ;;  %v268_v32 = vadd.f32 %v267_v24, %v266_v20  ;;  %vm382_vm5 = vcmask 125952   ;;  %v274_v35 = vrot.slane %v273_v27, 4  ;;  %s917_s26 = smov (!%p699_p0), 50   ;;  %s919_s15 = smov (!%p699_p0), 124  }
  0x31   : > { %v235_v33 = vadd.f32 %v234_v25, %v233_v16  ;;  %v242_v34 = vadd.f32 %v241_v26, %v240_v17  ;;  %v281_v36 = vrot.slane %v280_v28, 4  ;;  %v249_v37 = vadd.f32 %v248_v29, %v247_v21  ;;  %v228_v16 = vld [vmem:[%s1008_s22 + $0x70] sm:$0xff]  ;;  %s920_s27 = smov (!%p699_p0), 125   ;;  %s921_s28 = smov (!%p699_p0), 126  }
  0x32   : > { %v256_v38 = vadd.f32 %v255_v30, %v254_v22  ;;  %v262_v39 = vrot.slane %v261_v31, 2  ;;  %v269_v40 = vrot.slane %v268_v32, 2  ;;  %v275_v43 = vadd.f32 %v274_v35, %v273_v27  ;;  %v211_v17 = vld [vmem:[#allocation2 + $0x4] sm:$0xf]  ;;  %s922_s29 = smov (!%p699_p0), 127  }
  0x33   : > { %v236_v41 = vrot.slane %v235_v33, 1  ;;  %v243_v42 = vrot.slane %v242_v34, 1  ;;  %v282_v44 = vadd.f32 %v281_v36, %v280_v28  ;;  %v250_v45 = vrot.slane %v249_v37, 1 }
  0x34   : > { %v257_v46 = vrot.slane %v256_v38, 1  ;;  %v263_v47 = vadd.f32 %v262_v39, %v261_v31  ;;  %v270_v48 = vadd.f32 %v269_v40, %v268_v32  ;;  %v276_v52 = vrot.slane %v275_v43, 2 }
  0x35   : > { %v237_v50 = vadd.f32 %v236_v41, %v235_v33  ;;  %v244_v51 = vadd.f32 %v243_v42, %v242_v34  ;;  %v283_v53 = vrot.slane %v282_v44, 2  ;;  %v251_v54 = vadd.f32 %v250_v45, %v249_v37  ;;  %v229_v34 = vld [vmem:[%s1008_s22 + $0x78] sm:$0xff] }
  0x36   : > { %v258_v55 = vadd.f32 %v257_v46, %v256_v38  ;;  %v264_v56 = vrot.slane %v263_v47, 1  ;;  %v271_v57 = vrot.slane %v270_v48, 1  ;;  %v277_v61 = vadd.f32 %v276_v52, %v275_v43 }
  0x37   : > { %v360_v60 = vsel %vm359_vm2, %v244_v51, %v237_v50  ;;  %v284_v62 = vadd.f32 %v283_v53, %v282_v44  ;;  %v287_v63 = vsel %vm230_vm1, %v222_v49, 0.0  ;;  %v294_v9 = vsel %vm230_vm1, %v223_v58, 0.0 }
  0x38   : > { %v362_v0 = vsel %vm361_vm3, %v251_v54, %v360_v60  ;;  %v265_v1 = vadd.f32 %v264_v56, %v263_v47  ;;  %v272_v2 = vadd.f32 %v271_v57, %v270_v48  ;;  %v288_v5 = vrot.slane %v287_v63, 4 }
  0x39   : > { %v364_v6 = vsel %vm363_vm4, %v258_v55, %v362_v0  ;;  %v278_v7 = vrot.slane %v277_v61, 1  ;;  %v285_v8 = vrot.slane %v284_v62, 1  ;;  %v295_v13 = vrot.slane %v294_v9, 4 }
  0x3a   : > { %v378_v10 = vadd.f32 %v364_v6, %v210_v59  ;;  %v365_v11 = vsel %vm359_vm2, %v272_v2, %v265_v1  ;;  %v289_v12 = vadd.f32 %v288_v5, %v287_v63  ;;  %v301_v20 = vsel %vm230_vm1, %v224_v3, 0.0  ;;  %v212_v1 = vld [vmem:[#allocation2 + $0x8] sm:$0xf] }
  0x3b   : > { %v279_v18 = vadd.f32 %v278_v7, %v277_v61  ;;  %v286_v19 = vadd.f32 %v285_v8, %v284_v62  ;;  %v308_v21 = vsel %vm230_vm1, %v225_v4, 0.0  ;;  %v296_v23 = vadd.f32 %v295_v13, %v294_v9 }
  0x3c   : > { %383 = vst.msk [vmem:[#allocation2] sm:$0xf] %vm382_vm5, %v378_v10  ;;  %v290_v22 = vrot.slane %v289_v12, 2  ;;  %v302_v24 = vrot.slane %v301_v20, 4  ;;  %v309_v25 = vrot.slane %v308_v21, 4  ;;  %v315_v27 = vsel %vm230_vm1, %v226_v14, 0.0 }
  0x3d   : > { %v366_v26 = vsel %vm361_vm3, %v279_v18, %v365_v11  ;;  %v322_v28 = vsel %vm230_vm1, %v227_v15, 0.0  ;;  %v329_v29 = vsel %vm230_vm1, %v228_v16, 0.0  ;;  %v297_v32 = vrot.slane %v296_v23, 2 }
  0x3e   : > { %v367_v30 = vsel %vm363_vm4, %v286_v19, %v366_v26  ;;  %v291_v31 = vadd.f32 %v290_v22, %v289_v12  ;;  %v303_v33 = vadd.f32 %v302_v24, %v301_v20  ;;  %v310_v36 = vadd.f32 %v309_v25, %v308_v21 }
  0x3f   : > { %v379_v35 = vadd.f32 %v367_v30, %v211_v17  ;;  %v316_v37 = vrot.slane %v315_v27, 4  ;;  %v323_v38 = vrot.slane %v322_v28, 4  ;;  %v298_v40 = vadd.f32 %v297_v32, %v296_v23  ;;  %v213_v17 = vld [vmem:[#allocation2 + $0xc] sm:$0xf] }
  0x40   : > { %v292_v39 = vrot.slane %v291_v31, 1  ;;  %v304_v41 = vrot.slane %v303_v33, 2  ;;  %v330_v42 = vrot.slane %v329_v29, 4  ;;  %v311_v43 = vrot.slane %v310_v36, 2 }
  0x41   : > { %384 = vst.msk [vmem:[#allocation2 + $0x4] sm:$0xf] %vm382_vm5, %v379_v35  ;;  %v317_v44 = vadd.f32 %v316_v37, %v315_v27  ;;  %v324_v45 = vadd.f32 %v323_v38, %v322_v28  ;;  %v336_v46 = vsel %vm230_vm1, %v229_v34, 0.0  ;;  %v299_v48 = vrot.slane %v298_v40, 1 }
  0x42   : > { %v293_v47 = vadd.f32 %v292_v39, %v291_v31  ;;  %v305_v49 = vadd.f32 %v304_v41, %v303_v33  ;;  %v331_v50 = vadd.f32 %v330_v42, %v329_v29  ;;  %v312_v51 = vadd.f32 %v311_v43, %v310_v36 }
  0x43   : > { %v318_v52 = vrot.slane %v317_v44, 2  ;;  %v325_v53 = vrot.slane %v324_v45, 2  ;;  %v337_v54 = vrot.slane %v336_v46, 4  ;;  %v300_v55 = vadd.f32 %v299_v48, %v298_v40 }
  0x44   : > { %v306_v56 = vrot.slane %v305_v49, 1  ;;  %v332_v57 = vrot.slane %v331_v50, 2  ;;  %v313_v58 = vrot.slane %v312_v51, 1 }
  0x45   : > { %v319_v59 = vadd.f32 %v318_v52, %v317_v44  ;;  %v326_v60 = vadd.f32 %v325_v53, %v324_v45  ;;  %v338_v61 = vadd.f32 %v337_v54, %v336_v46  ;;  %v368_v63 = vsel %vm359_vm2, %v300_v55, %v293_v47 }
  0x46   : > { %v307_v62 = vadd.f32 %v306_v56, %v305_v49  ;;  %v333_v0 = vadd.f32 %v332_v57, %v331_v50  ;;  %v314_v2 = vadd.f32 %v313_v58, %v312_v51 }
  0x47   : > { %v320_v3 = vrot.slane %v319_v59, 1  ;;  %v327_v4 = vrot.slane %v326_v60, 1  ;;  %v339_v5 = vrot.slane %v338_v61, 2 }
  0x48   : > { %v369_v6 = vsel %vm361_vm3, %v307_v62, %v368_v63  ;;  %v334_v7 = vrot.slane %v333_v0, 1 }
  0x49   : > { %v370_v8 = vsel %vm363_vm4, %v314_v2, %v369_v6  ;;  %v321_v9 = vadd.f32 %v320_v3, %v319_v59  ;;  %v328_v10 = vadd.f32 %v327_v4, %v326_v60  ;;  %v340_v11 = vadd.f32 %v339_v5, %v338_v61 }
  0x4a   : > { %v380_v12 = vadd.f32 %v370_v8, %v212_v1  ;;  %v335_v13 = vadd.f32 %v334_v7, %v333_v0 }
  0x4b   : > { %v341_v14 = vrot.slane %v340_v11, 1  ;;  %v371_v15 = vsel %vm359_vm2, %v328_v10, %v321_v9 }
  0x4c   : > { %385 = vst.msk [vmem:[#allocation2 + $0x8] sm:$0xf] %vm382_vm5, %v380_v12  ;;  %v372_v16 = vsel %vm361_vm3, %v335_v13, %v371_v15 }
  0x4d   : > { %v342_v18 = vadd.f32 %v341_v14, %v340_v11 }
  0x4e   : > { %390 = sbr.rel (%p699_p0) target bundleno = 475 (0x1db), region = 44 }
  0x4f   : > { %v373_v19 = vsel %vm363_vm4, %v342_v18, %v372_v16 }
  0x50   : > { %v381_v20 = vadd.f32 %v373_v19, %v213_v17 }
  0x52   : > { %386 = vst.msk [vmem:[#allocation2 + $0xc] sm:$0xf] %vm382_vm5, %v381_v20 }
  0x53   : > { %v395_v21 = vld [vmem:[#allocation2] sm:$0xf]  ;;  %v413_v22 = vld [vmem:[#allocation2 + $0x8] sm:$0xf]  ;;  %v404_v25 = vld [vmem:[#allocation2 + $0x4] sm:$0xf]  ;;  %v430_v32 = vlaneseq }
  0x54   : > { %v396_v23 = vmul.f32 0.0625, %v395_v21  ;;  %v414_v24 = vmul.f32 0.0625, %v413_v22  ;;  %v405_v27 = vmul.f32 0.0625, %v404_v25  ;;  %vm391_vm6 = vcmask 11264   ;;  %v447_v39 = vld [vmem:[%s1116_s1] sm:$0xff]  ;;  %v705_v42 = vld [vmem:[%s1116_s1 + $0x10] sm:$0xff] }
  0x55   : > { %v918_v29 = vmov 0.0   ;;  %vm393_vm7 = vcmask 552464   ;;  %vm401_vm8 = vcmask 142352   ;;  %vm410_vm9 = vcmask 273552   ;;  %v608_v40 = vld [vmem:[%s1117_s2] sm:$0xff]  ;;  %v700_v45 = vld [vmem:[%s1116_s1 + $0x8] sm:$0xff] }
  0x56   : > { %398 = vrot.lane.b32.xlu0 %v396_v23, %s914_s21  ;;  %416 = vrot.lane.b32.xlu1 %v414_v24, %s915_s23  ;;  %392 = vst.msk [vmem:[#allocation3] sm:$0xf] %vm391_vm6, %v918_v29  ;;  %vm419_vm10 = vcmask 404752   ;;  %vm428_vm11 = vcmask 535952   ;;  %v431_v35 = vand.u32 127, %v430_v32  ;;  %vm460_vm13 = vcmask 1043456  }
  0x57   : > { %394 = vst.msk [vmem:[#allocation3] sm:$0xf] %vm393_vm7, %v918_v29  ;;  %vm456_vm14 = vcmask 31744   ;;  %v923_v41 = vmov 0   ;;  %v708_v49 = vld [vmem:[%s1116_s1 + $0x18] sm:$0xff]  ;;  %v711_v50 = vld [vmem:[%s1116_s1 + $0x20] sm:$0xff] }
  0x58   : > { %v436_v36 = vand.u32 15, %v431_v35  ;;  %794 = vset.pattern.permute.xlu2 %v923_v41  ;;  %795 = vset.pattern.permute.xlu0 %v923_v41  ;;  %vm615_vm2 = vcmask 523264  }
  0x59   : > { %v422_v26 = vld [vmem:[#allocation2 + $0xc] sm:$0xf] }
  0x5a   : > { %v423_v28 = vmul.f32 0.0625, %v422_v26  ;;  %vm445_vm12 = vcmp.ge.s32.totalorder %v436_v36, 2  ;;  %vm448_vm15 = vcmp.ge.s32.totalorder %v436_v36, 1  ;;  %vm574_vm0 = vcmp.lt.s32.totalorder %v436_v36, 14 }
  0x5b   : > { %vm540_vm1 = vcmp.lt.s32.totalorder %v436_v36, 15 }
  0x5e   : > { %407 = vrot.lane.b32.xlu0 %v405_v27, %s916_s25  ;;  %425 = vrot.lane.b32.xlu1 %v423_v28, %s917_s26 }
  0xc8   : > { %v399_v30 = vpop.permute.xlu0 %398  ;;  %v417_v31 = vpop.permute.xlu1 %416 }
  0xc9   : > { %402 = vst.msk [vmem:[#allocation3] sm:$0xf] %vm401_vm8, %v399_v30 }
  0xd0   : > { %v408_v33 = vpop.permute.xlu0 %407  ;;  %v426_v34 = vpop.permute.xlu1 %425 }
  0xd1   : > { %411 = vst.msk [vmem:[#allocation3] sm:$0xf] %vm410_vm9, %v408_v33 }
  0xd2   : > { %420 = vst.msk [vmem:[#allocation3] sm:$0xf] %vm419_vm10, %v417_v31 }
  0xd3   : > { %429 = vst.msk [vmem:[#allocation3] sm:$0xf] %vm428_vm11, %v426_v34 }
  0xda   : > { %v444_v37 = vld [vmem:[#allocation3] sm:$0xf] }
  0xdb   : > { %575 = vrot.lane.b32.xlu1 %v444_v37, %s919_s15  ;;  %541 = vrot.lane.b32.xlu0 %v444_v37, %s920_s27  ;;  %v446_v38 = vsel %vm445_vm12, %v444_v37, 0.0 }
  0xdc   : > { %512 = vrot.lane.b32.xlu2 %v444_v37, %s921_s28  ;;  %703 = vmatpush.msk.msra.mxu1 %vm460_vm13, %v446_v38 }
  0xdd   : > { %704 = vmatmul.msk.f32.vlgmr.msra.gmra.mxu1 %vm456_vm14, %v447_v39 }
  0xe4   : > { %450 = vrot.lane.b32.xlu2 %v444_v37, %s922_s29 }
  0xec   : > { %611 = vperm.xlu2 %794, %v608_v40  }
 0x136   : > { %v513_v43 = vpop.permute.xlu2 %512 }
 0x137   : > { %706 = vmatpush.msk.msra.mxu2 %vm460_vm13, %v513_v43 }
 0x138   : > { %707 = vmatmul.msk.f32.vlgmr.msra.gmra.mxu2 %vm456_vm14, %v705_v42 }
 0x13e   : > { %v451_v44 = vpop.permute.xlu2 %450 }
 0x13f   : > { %v453_v46 = vsel %vm448_vm15, %v451_v44, 0.0 }
 0x140   : > { %701 = vmatpush.msk.msra.mxu0 %vm460_vm13, %v453_v46 }
 0x141   : > { %702 = vmatmul.msk.f32.vlgmr.msra.gmra.mxu0 %vm456_vm14, %v700_v45 }
 0x146   : > { %v612_v61 = vpop.permute.xlu2 %611 }
 0x14d   : > { %v576_v47 = vpop.permute.xlu1 %575  ;;  %v542_v48 = vpop.permute.xlu0 %541 }
 0x14e   : > { %v578_v51 = vsel %vm574_vm0, %v576_v47, 0.0  ;;  %v544_v52 = vsel %vm540_vm1, %v542_v48, 0.0 }
 0x14f   : > { %709 = vmatpush.msk.msra.mxu3 %vm460_vm13, %v544_v52  ;;  %712 = vmatpush.msk.msrb.mxu0 %vm460_vm13, %v578_v51 }
 0x150   : > { %710 = vmatmul.msk.f32.vlgmr.msra.gmra.mxu3 %vm456_vm14, %v708_v49  ;;  %713 = vmatmul.msk.f32.vlgmr.msrb.gmra.mxu0 %vm456_vm14, %v711_v50 }
 0x15a   : > { %v507_v54 = vpop.f32.mrf.mxu1 }
 0x1bb   : > { %v536_v56 = vpop.f32.mrf.mxu2 }
 0x1be   : > { %v481_v53 = vpop.f32.mrf.mxu0 }
 0x1bf   : > { %v508_v55 = vadd.f32 %v507_v54, %v481_v53 }
 0x1c1   : > { %v539_v57 = vadd.f32 %v536_v56, %v508_v55 }
 0x1cd   : > { %v604_v59 = vpop.f32.mrf.mxu0 }
 0x1d3   : > { %v570_v58 = vpop.f32.mrf.mxu3 }
 0x1d4   : > { %v573_v60 = vadd.f32 %v570_v58, %v539_v57 }
 0x1d6   : > { %v607_v62 = vadd.f32 %v604_v59, %v573_v60 }
 0x1d8   : > { %v614_v63 = vadd.f32 %v612_v61, %v607_v62 }
 0x1da   : > { %616 = vst.msk [vmem:[#allocation7] sm:$0xff] %vm615_vm2, %v614_v63 }
 0x1db PF: > { %p729_p1 = scmp.eq.s32.totalorder %s691_s18, 1  ;;  %s627_s25 = sshll.u32 %s1118_s3, 4  ;;  %s628_s25 = int_to_ptr.hbm [resolvable:$true] %s627_s25 }
 0x1dc   : > { %s924_s26 = smov [#allocation7]  }
 0x1dd   : > { %s625_s15 = sshll.u32 %s924_s26, 4  ;;  %s626_s15 = int_to_ptr.vmem [resolvable:$true] %s625_s15 }
 0x1de   : > { %721 = dma.vmem_to_hbm [thread:$0]  (%p729_p1), %s626_s15, 128, %s628_s25, [#allocation6]  }
 0x1df   : > { %883 = dma.done.wait (%p729_p1), [#allocation6], 128  }
 0x1e0   : > { %885 = vsyncadd (%p729_p1), [#allocation6], 4294967168 }
 0x1e1 PF: > { %s17_s17 = sadd.s32 1, %s908_s17   ;;  %s1121_s12 = smov %s892_s13 }
 0x1e2   : > { %p14_p2 = scmp.ge.s32.totalorder %s17_s17, 4   ;;  %s1122_s13 = smov %s896_s14 }
 0x1e3   : > { %s1123_s14 = smov %s996_s24  ;;  %s1124_s15 = smov %s904_s16 }
 0x1e4   : > { %s1125_s16 = smov %s1127_s19  ;;  %16 = sbr.rel (!%p14_p2) target bundleno = 5 (0x5), region = 85 }
 0x1e9   :  { %641 = vsyncpa [#allocation5], 1 }
 0x1ea   :  { %643 = vsyncpa [#allocation5 + $0x1], 1 }
 0x1eb   :  { %644 = vsyncpa [#allocation6], 1 }
 0x1ec   :  { %646 = vsyncpa [#allocation6 + $0x1], 1 }

</bundles_post_ra>
